<compile_context>
chip_gen: v6e
topology: v6e:2x2x1
jax: 0.10.0
libtpu: 0.0.40
codegen_flags: <defaults>
</compile_context>

<pallas_src>
import jax
import jax.numpy as jnp
from jax.experimental import pallas as pl
from jax.experimental.pallas import tpu as pltpu


def _outconv_kernel(w_ref, b_ref, x_ref, o_ref):
    # w_ref: SMEM (Cout, Cin) f32, b_ref: SMEM (Cout,) f32  (scalar prefetch)
    # x_ref: VMEM (Nb, Cin, G, tile_m)    o_ref: VMEM (Nb, Cout, tile_m)
    nb, cin = x_ref.shape[0], x_ref.shape[1]
    cout = o_ref.shape[1]

    # Hoist all SMEM scalar reads; keeps the 2 scalar-ALU slots clear of the
    # unrolled madd chain below.
    w = [[w_ref[co, ci] for ci in range(cin)] for co in range(cout)]
    b = [b_ref[co] for co in range(cout)]

    for n in range(nb):                                  # static unroll, Nb <= 16
        # Load each (G, tile_m) input channel exactly once; reuse for all Cout.
        xs = [x_ref[n, ci] for ci in range(cin)]
        for co in range(cout):                           # static unroll, Cout ~ 3
            # 1x1 group conv: unrolled VPU scalar*vector madds, f32 accumulate
            # (promotion via the f32 scalar weights; no separate cast of x).
            acc = xs[0] * w[co][0]                       # (G, tile_m)
            for ci in range(1, cin):
                acc = acc + xs[ci] * w[co][ci]
            # GroupPooling: max over g (sublane reduce on the XLU); bias added
            # AFTER the max (group-invariant -> identical, Cout adds not G*Cout).
            pooled = jnp.max(acc, axis=0, keepdims=True) + b[co]     # (1, tile_m)
            o_ref[n, pl.ds(co, 1), :] = pooled.astype(o_ref.dtype)   # lane-dense


def outconv_forward(x, weight, bias, *, max_tile=32768,
                    target_step_bytes=4 << 20, max_batch_block=16):
    """x: (N, Cin, G, H, W); weight: (Cout, Cin); bias: (Cout,) -> (N, Cout, H, W)."""
    N, Cin, G, H, W = x.shape
    Cout = weight.shape[0]
    HW = H * W
    itemsize = jnp.dtype(x.dtype).itemsize

    # Free reshape (merges trailing contiguous dims): pixels become the lane axis.
    x3 = x.reshape(N, Cin, G, HW)

    # Pixel tile: full extent if it fits, else a multiple-of-128 tile
    # (lane rule: last block dim must be the full extent or a 128-multiple).
    assert max_tile >= 128
    tile_m = HW if HW <= max_tile else (max_tile // 128) * 128
    num_m = pl.cdiv(HW, tile_m)

    # Batch block: amortize the per-step grid overhead by moving ~4 MiB of x
    # per step (capped so the static unroll stays small).
    per_batch_bytes = Cin * G * tile_m * itemsize
    nb = max(1, min(N, target_step_bytes // max(per_batch_bytes, 1),
                    max_batch_block))

    # Guarantee >= 2 grid steps so both v7x TensorCores stream (mem-bound).
    if pl.cdiv(N, nb) * num_m < 2:
        if N >= 2:
            nb = pl.cdiv(N, 2)                 # -> >= 2 batch steps
        elif HW >= 256:                        # single batch: split pixels instead
            tile_m = max(128, ((HW // 2) // 128) * 128)
            num_m = pl.cdiv(HW, tile_m)

    grid = (pl.cdiv(N, nb), num_m)

    w = jnp.asarray(weight, jnp.float32)       # (Cout, Cin) -> SMEM, prefetched
    b = jnp.asarray(bias, jnp.float32)         # (Cout,)     -> SMEM, prefetched

    cost = pl.CostEstimate(
        flops=2 * N * HW * G * Cin * Cout,
        transcendentals=0,
        bytes_accessed=N * Cin * G * HW * itemsize + N * Cout * HW * itemsize,
    )

    out = pl.pallas_call(
        _outconv_kernel,
        out_shape=jax.ShapeDtypeStruct((N, Cout, HW), x.dtype),
        grid_spec=pltpu.PrefetchScalarGridSpec(
            num_scalar_prefetch=2,             # weight + bias tables
            grid=grid,
            in_specs=[
                pl.BlockSpec((nb, Cin, G, tile_m),
                             lambda n, m, w_s, b_s: (n, 0, 0, m)),
            ],
            out_specs=pl.BlockSpec((nb, Cout, tile_m),
                                   lambda n, m, w_s, b_s: (n, 0, m)),
        ),
        compiler_params=pltpu.CompilerParams(
            dimension_semantics=("parallel", "parallel"),
        ),
        cost_estimate=cost,
    )(w, b, x3)

    # Free reshape back; no output transpose needed in this layout.
    return out.reshape(N, Cout, H, W)


def outconv_reference(x, weight, bias):
    # Pure JAX reference: 1x1 group conv + bias, then max over the group axis.
    y = jnp.einsum("ncghw,oc->noghw", x.astype(jnp.float32),
                   weight.astype(jnp.float32))
    y = y + bias.astype(jnp.float32)[None, :, None, None, None]
    return jnp.max(y, axis=2)                                  # (N, Cout, H, W)


if __name__ == "__main__":
    # OutConv(in_channels=4, out_channels=3, rotNum=4, scaleList=[1.0, 0.8])
    in_channels, out_channels = 4, 3
    rot_num, scale_list = 4, [1.0, 0.8]
    G = rot_num * len(scale_list)
    N, H, W = 2, 16, 16

    key = jax.random.PRNGKey(0)
    kx, kw, kb = jax.random.split(key, 3)
    x = jax.random.normal(kx, (N, in_channels, G, H, W), dtype=jnp.float32)
    weight = jax.random.normal(kw, (out_channels, in_channels),
                               dtype=jnp.float32) * 0.1
    bias = jax.random.normal(kb, (out_channels,), dtype=jnp.float32) * 0.1

    fwd = jax.jit(outconv_forward)
    out = jax.block_until_ready(fwd(x, weight, bias))

    ref = outconv_reference(x, weight, bias)
    assert out.shape == (N, out_channels, H, W), out.shape
    assert jnp.allclose(out, ref, atol=1e-5, rtol=1e-5), (
        float(jnp.max(jnp.abs(out - ref))))
    print("KERNEL_OK")
</pallas_src>

<mosaic_0001>
module attributes {stable_mosaic.version = 11 : i64} {
  func.func @_outconv_kernel(%arg0: i32, %arg1: i32, %arg2: memref<3x4xf32, #tpu.memory_space<smem>>, %arg3: memref<3xf32, #tpu.memory_space<smem>>, %arg4: memref<1x4x8x256xf32, #tpu.memory_space<vmem>>, %arg5: memref<1x3x256xf32, #tpu.memory_space<vmem>>) attributes {dimension_semantics = [#tpu.dimension_semantics<parallel>, #tpu.dimension_semantics<parallel>], iteration_bounds = array<i64: 2, 1>, scalar_prefetch = 2 : i64, scratch_operands = 0 : i64, tpu.core_type = #tpu.core_type<tc>, window_params = [{transform_indices = @transform_0, window_bounds = array<i64: 1, 4, 8, 256>}, {transform_indices = @transform_1, window_bounds = array<i64: 1, 3, 256>}]} {
    %c0 = arith.constant 0 : index
    %c0_0 = arith.constant 0 : index
    %0 = memref.load %arg2[%c0, %c0_0] : memref<3x4xf32, #tpu.memory_space<smem>>
    %c0_1 = arith.constant 0 : index
    %c1 = arith.constant 1 : index
    %1 = memref.load %arg2[%c0_1, %c1] : memref<3x4xf32, #tpu.memory_space<smem>>
    %c0_2 = arith.constant 0 : index
    %c2 = arith.constant 2 : index
    %2 = memref.load %arg2[%c0_2, %c2] : memref<3x4xf32, #tpu.memory_space<smem>>
    %c0_3 = arith.constant 0 : index
    %c3 = arith.constant 3 : index
    %3 = memref.load %arg2[%c0_3, %c3] : memref<3x4xf32, #tpu.memory_space<smem>>
    %c1_4 = arith.constant 1 : index
    %c0_5 = arith.constant 0 : index
    %4 = memref.load %arg2[%c1_4, %c0_5] : memref<3x4xf32, #tpu.memory_space<smem>>
    %c1_6 = arith.constant 1 : index
    %c1_7 = arith.constant 1 : index
    %5 = memref.load %arg2[%c1_6, %c1_7] : memref<3x4xf32, #tpu.memory_space<smem>>
    %c1_8 = arith.constant 1 : index
    %c2_9 = arith.constant 2 : index
    %6 = memref.load %arg2[%c1_8, %c2_9] : memref<3x4xf32, #tpu.memory_space<smem>>
    %c1_10 = arith.constant 1 : index
    %c3_11 = arith.constant 3 : index
    %7 = memref.load %arg2[%c1_10, %c3_11] : memref<3x4xf32, #tpu.memory_space<smem>>
    %c2_12 = arith.constant 2 : index
    %c0_13 = arith.constant 0 : index
    %8 = memref.load %arg2[%c2_12, %c0_13] : memref<3x4xf32, #tpu.memory_space<smem>>
    %c2_14 = arith.constant 2 : index
    %c1_15 = arith.constant 1 : index
    %9 = memref.load %arg2[%c2_14, %c1_15] : memref<3x4xf32, #tpu.memory_space<smem>>
    %c2_16 = arith.constant 2 : index
    %c2_17 = arith.constant 2 : index
    %10 = memref.load %arg2[%c2_16, %c2_17] : memref<3x4xf32, #tpu.memory_space<smem>>
    %c2_18 = arith.constant 2 : index
    %c3_19 = arith.constant 3 : index
    %11 = memref.load %arg2[%c2_18, %c3_19] : memref<3x4xf32, #tpu.memory_space<smem>>
    %c0_20 = arith.constant 0 : index
    %12 = memref.load %arg3[%c0_20] : memref<3xf32, #tpu.memory_space<smem>>
    %c1_21 = arith.constant 1 : index
    %13 = memref.load %arg3[%c1_21] : memref<3xf32, #tpu.memory_space<smem>>
    %c2_22 = arith.constant 2 : index
    %14 = memref.load %arg3[%c2_22] : memref<3xf32, #tpu.memory_space<smem>>
    %c0_23 = arith.constant 0 : index
    %c0_24 = arith.constant 0 : index
    %c0_25 = arith.constant 0 : index
    %c0_26 = arith.constant 0 : index
    %15 = vector.load %arg4[%c0_23, %c0_24, %c0_25, %c0_26] : memref<1x4x8x256xf32, #tpu.memory_space<vmem>>, vector<1x1x8x256xf32>
    %16 = vector.shape_cast %15 : vector<1x1x8x256xf32> to vector<8x256xf32>
    %c0_27 = arith.constant 0 : index
    %c1_28 = arith.constant 1 : index
    %c0_29 = arith.constant 0 : index
    %c0_30 = arith.constant 0 : index
    %17 = vector.load %arg4[%c0_27, %c1_28, %c0_29, %c0_30] : memref<1x4x8x256xf32, #tpu.memory_space<vmem>>, vector<1x1x8x256xf32>
    %18 = vector.shape_cast %17 : vector<1x1x8x256xf32> to vector<8x256xf32>
    %c0_31 = arith.constant 0 : index
    %c2_32 = arith.constant 2 : index
    %c0_33 = arith.constant 0 : index
    %c0_34 = arith.constant 0 : index
    %19 = vector.load %arg4[%c0_31, %c2_32, %c0_33, %c0_34] : memref<1x4x8x256xf32, #tpu.memory_space<vmem>>, vector<1x1x8x256xf32>
    %20 = vector.shape_cast %19 : vector<1x1x8x256xf32> to vector<8x256xf32>
    %c0_35 = arith.constant 0 : index
    %c3_36 = arith.constant 3 : index
    %c0_37 = arith.constant 0 : index
    %c0_38 = arith.constant 0 : index
    %21 = vector.load %arg4[%c0_35, %c3_36, %c0_37, %c0_38] : memref<1x4x8x256xf32, #tpu.memory_space<vmem>>, vector<1x1x8x256xf32>
    %22 = vector.shape_cast %21 : vector<1x1x8x256xf32> to vector<8x256xf32>
    %23 = vector.broadcast %0 : f32 to vector<8x256xf32>
    %24 = arith.mulf %16, %23 : vector<8x256xf32>
    %25 = vector.broadcast %1 : f32 to vector<8x256xf32>
    %26 = arith.mulf %18, %25 : vector<8x256xf32>
    %27 = arith.addf %24, %26 : vector<8x256xf32>
    %28 = vector.broadcast %2 : f32 to vector<8x256xf32>
    %29 = arith.mulf %20, %28 : vector<8x256xf32>
    %30 = arith.addf %27, %29 : vector<8x256xf32>
    %31 = vector.broadcast %3 : f32 to vector<8x256xf32>
    %32 = arith.mulf %22, %31 : vector<8x256xf32>
    %33 = arith.addf %30, %32 : vector<8x256xf32>
    %cst = arith.constant dense<0xFF800000> : vector<256xf32>
    %34 = vector.multi_reduction <maximumf>, %33, %cst [0] : vector<8x256xf32> to vector<256xf32>
    %35 = vector.shape_cast %34 : vector<256xf32> to vector<1x256xf32>
    %36 = vector.broadcast %12 : f32 to vector<1x256xf32>
    %37 = arith.addf %35, %36 : vector<1x256xf32>
    %c0_39 = arith.constant 0 : index
    %c0_40 = arith.constant 0 : index
    %c0_41 = arith.constant 0 : index
    %38 = vector.load %arg5[%c0_39, %c0_40, %c0_41] : memref<1x3x256xf32, #tpu.memory_space<vmem>>, vector<1x1x256xf32>
    %39 = vector.shape_cast %38 : vector<1x1x256xf32> to vector<1x256xf32>
    %40 = vector.shape_cast %37 : vector<1x256xf32> to vector<1x1x256xf32>
    tpu.vector_store %arg5[%c0_39, %c0_40, %c0_41], %40 {strides = array<i32>} : memref<1x3x256xf32, #tpu.memory_space<vmem>>, vector<1x1x256xf32>,
    %41 = vector.broadcast %4 : f32 to vector<8x256xf32>
    %42 = arith.mulf %16, %41 : vector<8x256xf32>
    %43 = vector.broadcast %5 : f32 to vector<8x256xf32>
    %44 = arith.mulf %18, %43 : vector<8x256xf32>
    %45 = arith.addf %42, %44 : vector<8x256xf32>
    %46 = vector.broadcast %6 : f32 to vector<8x256xf32>
    %47 = arith.mulf %20, %46 : vector<8x256xf32>
    %48 = arith.addf %45, %47 : vector<8x256xf32>
    %49 = vector.broadcast %7 : f32 to vector<8x256xf32>
    %50 = arith.mulf %22, %49 : vector<8x256xf32>
    %51 = arith.addf %48, %50 : vector<8x256xf32>
    %cst_42 = arith.constant dense<0xFF800000> : vector<256xf32>
    %52 = vector.multi_reduction <maximumf>, %51, %cst_42 [0] : vector<8x256xf32> to vector<256xf32>
    %53 = vector.shape_cast %52 : vector<256xf32> to vector<1x256xf32>
    %54 = vector.broadcast %13 : f32 to vector<1x256xf32>
    %55 = arith.addf %53, %54 : vector<1x256xf32>
    %c0_43 = arith.constant 0 : index
    %c1_44 = arith.constant 1 : index
    %c0_45 = arith.constant 0 : index
    %56 = vector.load %arg5[%c0_43, %c1_44, %c0_45] : memref<1x3x256xf32, #tpu.memory_space<vmem>>, vector<1x1x256xf32>
    %57 = vector.shape_cast %56 : vector<1x1x256xf32> to vector<1x256xf32>
    %58 = vector.shape_cast %55 : vector<1x256xf32> to vector<1x1x256xf32>
    tpu.vector_store %arg5[%c0_43, %c1_44, %c0_45], %58 {strides = array<i32>} : memref<1x3x256xf32, #tpu.memory_space<vmem>>, vector<1x1x256xf32>,
    %59 = vector.broadcast %8 : f32 to vector<8x256xf32>
    %60 = arith.mulf %16, %59 : vector<8x256xf32>
    %61 = vector.broadcast %9 : f32 to vector<8x256xf32>
    %62 = arith.mulf %18, %61 : vector<8x256xf32>
    %63 = arith.addf %60, %62 : vector<8x256xf32>
    %64 = vector.broadcast %10 : f32 to vector<8x256xf32>
    %65 = arith.mulf %20, %64 : vector<8x256xf32>
    %66 = arith.addf %63, %65 : vector<8x256xf32>
    %67 = vector.broadcast %11 : f32 to vector<8x256xf32>
    %68 = arith.mulf %22, %67 : vector<8x256xf32>
    %69 = arith.addf %66, %68 : vector<8x256xf32>
    %cst_46 = arith.constant dense<0xFF800000> : vector<256xf32>
    %70 = vector.multi_reduction <maximumf>, %69, %cst_46 [0] : vector<8x256xf32> to vector<256xf32>
    %71 = vector.shape_cast %70 : vector<256xf32> to vector<1x256xf32>
    %72 = vector.broadcast %14 : f32 to vector<1x256xf32>
    %73 = arith.addf %71, %72 : vector<1x256xf32>
    %c0_47 = arith.constant 0 : index
    %c2_48 = arith.constant 2 : index
    %c0_49 = arith.constant 0 : index
    %74 = vector.load %arg5[%c0_47, %c2_48, %c0_49] : memref<1x3x256xf32, #tpu.memory_space<vmem>>, vector<1x1x256xf32>
    %75 = vector.shape_cast %74 : vector<1x1x256xf32> to vector<1x256xf32>
    %76 = vector.shape_cast %73 : vector<1x256xf32> to vector<1x1x256xf32>
    tpu.vector_store %arg5[%c0_47, %c2_48, %c0_49], %76 {strides = array<i32>} : memref<1x3x256xf32, #tpu.memory_space<vmem>>, vector<1x1x256xf32>,
    return
  }
  func.func @transform_0(%arg0: i32, %arg1: i32, %arg2: memref<3x4xf32, #tpu.memory_space<smem>>, %arg3: memref<3xf32, #tpu.memory_space<smem>>) -> (i32, i32, i32, i32) {
    %c0_i32 = arith.constant 0 : i32
    %c0_i32_0 = arith.constant 0 : i32
    %c0_i32_1 = arith.constant 0 : i32
    return %arg0, %c0_i32, %c0_i32_0, %arg1 : i32, i32, i32, i32
  }
  func.func @transform_1(%arg0: i32, %arg1: i32, %arg2: memref<3x4xf32, #tpu.memory_space<smem>>, %arg3: memref<3xf32, #tpu.memory_space<smem>>) -> (i32, i32, i32) {
    %c0_i32 = arith.constant 0 : i32
    %c0_i32_0 = arith.constant 0 : i32
    return %arg0, %c0_i32, %arg1 : i32, i32, i32
  }
}

</mosaic_0001>

<bundles_post_ra>
// kernel: outconv_forward.1
= control target key start
LH: loop header
LB: loop body
LE: loop exit
PB: predicated region body
PF: predicated region fallthrough
CT: control target
= control target key end

     0   :  { %s699_s0 = inlined_call_operand.vmem [shape: f32[3,4], index: 0, kind: input, shape index: {}]   ;;  %s700_s2 = inlined_call_operand.vmem [shape: f32[2,4,8,256], index: 2, kind: input, shape index: {}]   ;;  %s701_s3 = inlined_call_operand.vmem [shape: f32[2,3,256], index: 3, kind: output, shape index: {}]   ;;  %s702_s1 = inlined_call_operand.vmem [shape: f32[3], index: 1, kind: input, shape index: {}]  }
   0x1   :  { %s8_s14 = sshll.u32 %s699_s0, 4  ;;  %s12_s17 = sshll.u32 %s702_s1, 4  ;;  %s9_s14 = int_to_ptr.vmem [resolvable:$true] %s8_s14  ;;  %s13_s17 = int_to_ptr.vmem [resolvable:$true] %s12_s17 }
   0x2   :  { %s504_s18 = scalar_lea.vmem %s9_s14, 64  ;;  %p509_p1 = scmp.lt.s32.totalorder %s9_s14, %s9_s14 }
   0x3   :  { %p505_p0 = scmp.ne.s32.totalorder %s9_s14, %s504_s18  ;;  %p510_p2 = scmp.lt.s32.totalorder %s504_s18, %s504_s18 }
   0x5   :  { %p511_p3 = por %p510_p2, %p509_p1 }
   0x7   :  { %p512_p4 = pnand %p511_p3, %p505_p0 }
   0x9   :  { %515 = shalt.err (!%p512_p4)  }
   0xa   :  { %s554_s19 = smov [#allocation3]   ;;  %s516_s20 = scalar_lea.vmem %s13_s17, 16 }
   0xb   :  { %11 = dma.vmem_to_smem %s9_s14, 64, %s554_s19, [#allocation2] }
   0xc   :  { %p517_p5 = scmp.ne.s32.totalorder %s13_s17, %s516_s20  ;;  %p521_p6 = scmp.lt.s32.totalorder %s13_s17, %s13_s17 }
   0xd   :  { %p522_p7 = scmp.lt.s32.totalorder %s516_s20, %s516_s20 }
   0xf   :  { %p523_p8 = por %p522_p7, %p521_p6 }
  0x11   :  { %p524_p9 = pnand %p523_p8, %p517_p5 }
  0x13   :  { %527 = shalt.err (!%p524_p9)  }
  0x14   :  { %s555_s0 = smov [#allocation4]  }
  0x15   :  { %15 = dma.vmem_to_smem %s13_s17, 16, %s555_s0, [#allocation2] }
  0x16   :  { %540 = dma.done.wait [#allocation2], 80 }
  0x17   :  { %541 = vsyncadd [#allocation2], 4294967216 }
  0x18   :  { %17 = sfence }
  0x19   :  { %s583_s1 = smov 0   ;;  %s585_s21 = smov 0  }
  0x1a   :  { %s587_s22 = smov 0  }
  0x1b LB: > { %s35_s23 = sadd.s32 1, %s548_s21  ;;  %p447_p10 = scmp.ge.s32.totalorder %s552_s22, 1  ;;  %s552_s22 = sphi %s587_s22, %s23_s22   ;;  %s548_s21 = sphi %s585_s21, %s706_s21   ;;  %s544_s1 = sphi %s583_s1, %s705_s1  }
  0x1c   : > { %p37_p11 = scmp.ge.s32.totalorder %s35_s23, 2  ;;  %p120_p12 = scmp.lt.s32.totalorder %s552_s22, 3 }
  0x1e   : > { %s708_s23 = smov (%p37_p11, %s35_s23), 0  ;;  %p121_p13 = pnand %p447_p10, %p120_p12 }
  0x1f   : > { %p149_p0 = scmp.lt.s32.totalorder (!%p121_p13), %s544_s1, 1  ;;  %s168_s24 = sld [smem:[#allocation3]] (!%p121_p13) }
  0x20   : > { %124 = sbr.rel (%p121_p13) target bundleno = 81 (0x51), region = 24  ;;  %s452_s25 = sld [smem:[#allocation3 + $0x1]] (!%p121_p13) }
  0x21   : > { %s453_s26 = sld [smem:[#allocation3 + $0x2]] (!%p121_p13) }
  0x22   : > { %s607_s4 = sld [smem:[#allocation3 + $0x3]] (!%p121_p13) }
  0x23   : > { %s615_s5 = sld [smem:[#allocation4]] (!%p121_p13) }
  0x24   : > { %s455_s6 = sld [smem:[#allocation3 + $0x80]] (!%p121_p13) }
  0x25   : > { %s710_s1 = smov (!%p149_p0, %s544_s1), 1  ;;  %v194_v3 = vstv %s168_s24  ;;  %s627_s7 = sld [smem:[#allocation3 + $0x81]]  ;;  %v233_v19 = vlaneseq  ;;  %v556_v23 = vmov 1966171168  }
  0x26   : > { %s475_s27 = sshll.u32 %s710_s1, 6  ;;  %v197_v9 = vstv %s452_s25  ;;  %s457_s8 = sld [smem:[#allocation3 + $0x82]]  ;;  %v231_v24 = vunpack.c.l.s4 %v556_v23 }
  0x27   : > { %s156_s30 = scalar_lea.vmem %s700_s2, %s475_s27  ;;  %v202_v12 = vstv %s453_s26  ;;  %s635_s9 = sld [smem:[#allocation3 + $0x83]]  ;;  %v234_v33 = vshrl.u32 %v233_v19, 7  ;;  %vm679_vm0 = vcmp.lt.s32.totalorder %v233_v19, 256 }
  0x28   : > { %v609_v0 = vld [vmem:[%s156_s30] sm:$0xff]  ;;  %v611_v1 = vld [vmem:[%s156_s30 + $0x8] sm:$0xff]  ;;  %v613_v2 = vld [vmem:[%s156_s30 + $0x10] sm:$0xff]  ;;  %v207_v22 = vstv %s607_s4  ;;  %s640_s10 = sld [smem:[#allocation3 + $0x100]]  ;;  %v232_v32 = vunpack.c.0.s8 %v231_v24  ;;  %s476_s15 = sshll.u32 %s710_s1, 3 }
  0x29   : > { %v617_v4 = vld [vmem:[%s156_s30 + $0x18] sm:$0xff]  ;;  %v619_v5 = vld [vmem:[%s156_s30 + $0x20] sm:$0xff]  ;;  %v621_v6 = vld [vmem:[%s156_s30 + $0x28] sm:$0xff]  ;;  %v195_v7 = vmul.f32 %v194_v3, %v609_v0  ;;  %v196_v8 = vmul.f32 %v194_v3, %v611_v1  ;;  %v198_v10 = vmul.f32 %v613_v2, %v197_v9  ;;  %s642_s11 = sld [smem:[#allocation3 + $0x101]]  ;;  %v224_v40 = vstv %s615_s5  ;;  %s166_s19 = scalar_lea.vmem %s701_s3, %s476_s15 }
  0x2a   : > { %v199_v11 = vmul.f32 %v617_v4, %v197_v9  ;;  %v629_v13 = vld [vmem:[%s156_s30 + $0x30] sm:$0xff]  ;;  %v631_v14 = vld [vmem:[%s156_s30 + $0x38] sm:$0xff]  ;;  %v203_v17 = vmul.f32 %v619_v5, %v202_v12  ;;  %v204_v18 = vmul.f32 %v621_v6, %v202_v12  ;;  %v250_v27 = vstv %s455_s6  ;;  %s646_s12 = sld [smem:[#allocation3 + $0x102]] }
  0x2b   : > { %v200_v15 = vadd.f32 %v198_v10, %v195_v7  ;;  %v208_v25 = vmul.f32 %v629_v13, %v207_v22  ;;  %v209_v26 = vmul.f32 %v631_v14, %v207_v22  ;;  %v251_v30 = vmul.f32 %v250_v27, %v609_v0  ;;  %s650_s13 = sld [smem:[#allocation3 + $0x103]] }
  0x2c   : > { %v201_v16 = vadd.f32 %v199_v11, %v196_v8  ;;  %v252_v31 = vmul.f32 %v250_v27, %v611_v1  ;;  %v253_v34 = vstv %s627_s7  ;;  %v258_v35 = vstv %s457_s8  ;;  %s668_s14 = sld [smem:[#allocation4 + $0x1]] }
  0x2d   : > { %v205_v20 = vadd.f32 %v203_v17, %v200_v15  ;;  %v254_v38 = vmul.f32 %v613_v2, %v253_v34  ;;  %v255_v39 = vmul.f32 %v617_v4, %v253_v34  ;;  %v259_v41 = vmul.f32 %v619_v5, %v258_v35  ;;  %s464_s16 = sld [smem:[#allocation4 + $0x2]] }
  0x2e   : > { %v206_v21 = vadd.f32 %v204_v18, %v201_v16  ;;  %v260_v42 = vmul.f32 %v621_v6, %v258_v35  ;;  %v263_v43 = vstv %s635_s9  ;;  %v303_v50 = vstv %s640_s10 }
  0x2f   : > { %v210_v28 = vadd.f32 %v208_v25, %v205_v20  ;;  %v256_v46 = vadd.f32 %v254_v38, %v251_v30  ;;  %v257_v47 = vadd.f32 %v255_v39, %v252_v31  ;;  %v264_v48 = vmul.f32 %v629_v13, %v263_v43 }
  0x30   : > { %v211_v29 = vadd.f32 %v209_v26, %v206_v21  ;;  %v265_v49 = vmul.f32 %v631_v14, %v263_v43  ;;  %v306_v51 = vstv %s642_s11  ;;  %v304_v56 = vmul.f32 %v303_v50, %v609_v0 }
  0x31   : > { %v212_v36 = vrot.slane %v210_v28, 4  ;;  %v261_v54 = vadd.f32 %v259_v41, %v256_v46  ;;  %v262_v55 = vadd.f32 %v260_v42, %v257_v47  ;;  %v305_v57 = vmul.f32 %v303_v50, %v611_v1 }
  0x32   : > { %v218_v37 = vrot.slane %v211_v29, 4  ;;  %v307_v58 = vmul.f32 %v613_v2, %v306_v51  ;;  %v308_v59 = vmul.f32 %v617_v4, %v306_v51  ;;  %v311_v8 = vstv %s646_s12 }
  0x33   : > { %v213_v44 = vmax.f32 %v210_v28, %v212_v36  ;;  %v266_v62 = vadd.f32 %v264_v48, %v261_v54  ;;  %v267_v63 = vadd.f32 %v265_v49, %v262_v55  ;;  %v316_v9 = vstv %s650_s13 }
  0x34   : > { %v219_v45 = vmax.f32 %v211_v29, %v218_v37  ;;  %v309_v3 = vadd.f32 %v307_v58, %v304_v56  ;;  %v310_v7 = vadd.f32 %v308_v59, %v305_v57  ;;  %v312_v0 = vmul.f32 %v619_v5, %v311_v8 }
  0x35   : > { %v214_v52 = vrot.slane %v213_v44, 2  ;;  %v268_v12 = vrot.slane %v266_v62, 4  ;;  %v274_v15 = vrot.slane %v267_v63, 4  ;;  %v313_v1 = vmul.f32 %v621_v6, %v311_v8 }
  0x36   : > { %v220_v53 = vrot.slane %v219_v45, 2  ;;  %v317_v2 = vmul.f32 %v629_v13, %v316_v9  ;;  %v318_v4 = vmul.f32 %v631_v14, %v316_v9  ;;  %v235_v21 = vsub.s32 %v232_v32, %v234_v33 }
  0x37   : > { %v215_v60 = vmax.f32 %v213_v44, %v214_v52  ;;  %v269_v18 = vmax.f32 %v266_v62, %v268_v12  ;;  %v275_v20 = vmax.f32 %v267_v63, %v274_v15  ;;  %v314_v22 = vadd.f32 %v312_v0, %v309_v3 }
  0x38   : > { %v221_v61 = vmax.f32 %v219_v45, %v220_v53  ;;  %v315_v23 = vadd.f32 %v313_v1, %v310_v7  ;;  %v280_v33 = vstv %s668_s14  ;;  %v333_v50 = vstv %s464_s16 }
  0x39   : > { %v216_v10 = vrot.slane %v215_v60, 1  ;;  %v270_v26 = vrot.slane %v269_v18, 2  ;;  %v276_v27 = vrot.slane %v275_v20, 2  ;;  %v319_v5 = vadd.f32 %v317_v2, %v314_v22 }
  0x3a   : > { %v222_v11 = vrot.slane %v221_v61, 1  ;;  %v320_v28 = vadd.f32 %v318_v4, %v315_v23 }
  0x3b   : > { %v217_v16 = vmax.f32 %v215_v60, %v216_v10  ;;  %v271_v29 = vmax.f32 %v269_v18, %v270_v26  ;;  %v277_v13 = vmax.f32 %v275_v20, %v276_v27  ;;  %v321_v30 = vrot.slane %v319_v5, 4 }
  0x3c   : > { %v223_v17 = vmax.f32 %v221_v61, %v222_v11  ;;  %v327_v14 = vrot.slane %v320_v28, 4 }
  0x3d   : > { %v225_v24 = vadd.f32 %v224_v40, %v217_v16  ;;  %v272_v34 = vrot.slane %v271_v29, 1  ;;  %v278_v35 = vrot.slane %v277_v13, 1  ;;  %v322_v36 = vmax.f32 %v319_v5, %v321_v30 }
  0x3e   : > { %v226_v25 = vadd.f32 %v224_v40, %v223_v17  ;;  %v328_v37 = vmax.f32 %v320_v28, %v327_v14 }
  0x3f   : > { %v273_v39 = vmax.f32 %v271_v29, %v272_v34  ;;  %v279_v40 = vmax.f32 %v277_v13, %v278_v35  ;;  %v323_v41 = vrot.slane %v322_v36, 2 }
  0x40   : > { %v229_v6 = vcombine.low %v225_v24, %v226_v25  ;;  %v329_v42 = vrot.slane %v328_v37, 2 }
  0x41   : > { %v281_v43 = vadd.f32 %v280_v33, %v273_v39  ;;  %v282_v44 = vadd.f32 %v280_v33, %v279_v40  ;;  %v324_v45 = vmax.f32 %v322_v36, %v323_v41 }
  0x42   : > { %v236_v31 = vrot.slane %v229_v6, %v235_v21  ;;  %v330_v46 = vmax.f32 %v328_v37, %v329_v42 }
  0x43   : > { %v285_v47 = vcombine.low %v281_v43, %v282_v44  ;;  %v325_v19 = vrot.slane %v324_v45, 1 }
  0x44   : > { %v243_v38 = vrot.slane %v236_v31, %v235_v21  ;;  %v331_v48 = vrot.slane %v330_v46, 1 }
  0x45   : > { %v292_v49 = vrot.slane %v285_v47, %v235_v21  ;;  %v326_v51 = vmax.f32 %v324_v45, %v325_v19 }
  0x46   : > { %249 = vst.msk [vmem:[%s166_s19] ss:$4 sm:$0x3] %vm679_vm0, %v243_v38  ;;  %v332_v52 = vmax.f32 %v330_v46, %v331_v48 }
  0x47   : > { %v299_v53 = vrot.slane %v292_v49, %v235_v21  ;;  %v334_v54 = vadd.f32 %v333_v50, %v326_v51 }
  0x48   : > { %v335_v55 = vadd.f32 %v333_v50, %v332_v52 }
  0x49   : > { %471 = vst.msk [vmem:[%s166_s19 + $0x1] ss:$4 sm:$0x3] %vm679_vm0, %v299_v53 }
  0x4a   : > { %v338_v56 = vcombine.low %v334_v54, %v335_v55 }
  0x4c   : > { %v345_v57 = vrot.slane %v338_v56, %v235_v21 }
  0x4e   : > { %v352_v58 = vrot.slane %v345_v57, %v235_v21 }
  0x50   : > { %472 = vst.msk [vmem:[%s166_s19 + $0x2] ss:$4 sm:$0x3] %vm679_vm0, %v352_v58 }
  0x51 PF: > { %s23_s22 = sadd.s32 1, %s552_s22   ;;  %s705_s1 = smov %s548_s21 }
  0x52   : > { %p20_p1 = scmp.ge.s32.totalorder %s23_s22, 4   ;;  %s706_s21 = smov %s708_s23 }
  0x54   :  { %22 = sbr.rel (!%p20_p1) target bundleno = 27 (0x1b), region = 59 }

</bundles_post_ra>
